<compile_context>
chip_gen: v7x
topology: tpu7x:2x2x1
jax: 0.10.0
libtpu: 0.0.40
codegen_flags: <defaults>
</compile_context>

<pallas_src>
import functools

import jax
import jax.numpy as jnp
from jax.experimental import pallas as pl
from jax.experimental.pallas import tpu as pltpu


def _round_up(n, m):
    return ((n + m - 1) // m) * m


def fraud_dnn_kernel(x_ref, w1_ref, b1_ref, w2_ref, b2_ref, w3_ref, b3_ref,
                     o_ref, *, mxu_dtype):
    # Layer 1: Linear(D,128) + ReLU   (Dropout == identity in eval mode).
    # x streams from HBM in its native f32; the MXU-operand cast happens in
    # VMEM so HBM traffic is unchanged. Accumulation stays f32.
    x = x_ref[...].astype(mxu_dtype)
    h1 = jnp.dot(x, w1_ref[...], preferred_element_type=jnp.float32)
    h1 = jnp.maximum(h1 + b1_ref[...], 0.0)

    # Layer 2: Linear(128,64) + ReLU  (Dropout == identity in eval mode).
    h2 = jnp.dot(h1.astype(mxu_dtype), w2_ref[...],
                 preferred_element_type=jnp.float32)
    h2 = jnp.maximum(h2 + b2_ref[...], 0.0)

    # Layer 3: Linear(64,1) + Sigmoid, done on VPU/XLU instead of an N=1 MXU
    # matmul: per-row dot with the (1,64) weight row via multiply + lane-sum.
    # Result is written lane-dense: o_ref block is (1, TB), batch on lanes.
    logit = jnp.sum(h2 * w3_ref[...], axis=-1).reshape(1, -1) + b3_ref[...]
    o_ref[...] = jax.nn.sigmoid(logit).astype(o_ref.dtype)


def fraud_dnn_forward(x_seq, params, *, block_b=2048, mxu_dtype=jnp.bfloat16):
    """x_seq: [B, seq_len, num_features] -> probabilities [B, 1] (float32).

    block_b:   max batch rows per grid step (rounded to a multiple of 128).
    mxu_dtype: MXU operand dtype for the two matmuls (bf16 default; weights are
               cast in the wrapper, the x tile in-kernel). Accumulation is f32.
    """
    w1, b1, w2, b2, w3, b3 = params
    B = x_seq.shape[0]
    x = x_seq.reshape(B, -1)          # flatten == x.view(B, -1); no copy
    if x.dtype != jnp.float32:
        x = x.astype(jnp.float32)
    D = x.shape[1]                    # e.g. 120 — kept un-padded (legal: block
                                      # last dim equals the full array dim)

    # --- batch tile: multiple of 128, as few tiles as possible under block_b;
    #     force >= 2 tiles for larger batches so v7x's two TensorCores both
    #     get work (no-op on single-core v5e/v6e). Tile size is derived from B
    #     so at most one partial tile of padding is ever added.
    num_tiles = pl.cdiv(B, block_b)
    if B > 256:
        num_tiles = max(num_tiles, 2)
    tb = _round_up(pl.cdiv(B, num_tiles), 128)
    b_pad = _round_up(B, tb)
    if b_pad != B:
        x = jnp.pad(x, ((0, b_pad - B), (0, 0)))
    num_tiles = b_pad // tb

    # --- weights / biases (tiny, VMEM-resident for the whole grid) ----------
    w1c = w1.astype(mxu_dtype)                      # (D, 128)
    w2c = w2.astype(mxu_dtype)                      # (128, 64)
    b1c = b1.reshape(1, -1).astype(jnp.float32)     # (1, 128)
    b2c = b2.reshape(1, -1).astype(jnp.float32)     # (1, 64)
    w3_row = w3.reshape(1, -1).astype(jnp.float32)  # (64,1) -> (1,64)
    b3c = b3.reshape(1, 1).astype(jnp.float32)      # (1, 1)

    x_spec = pl.BlockSpec((tb, D), lambda i: (i, 0))
    # Constant index_map -> fetched once, kept resident; no per-step re-DMA.
    resident = lambda a: pl.BlockSpec(a.shape, lambda i: (0, 0))
    # Lane-dense (1, tb) row of the (1, b_pad) output slab (constraint-clean).
    out_spec = pl.BlockSpec((1, tb), lambda i: (0, i))

    flops = 2 * b_pad * (D * 128 + 128 * 64 + 64)
    bytes_accessed = (
        4 * b_pad * D                                   # x stream (f32)
        + w1c.size * jnp.dtype(mxu_dtype).itemsize
        + w2c.size * jnp.dtype(mxu_dtype).itemsize
        + 4 * (b1c.size + b2c.size + w3_row.size + b3c.size)
        + 4 * b_pad                                     # output
    )
    cost = pl.CostEstimate(flops=flops, transcendentals=b_pad,
                           bytes_accessed=bytes_accessed)

    out = pl.pallas_call(
        functools.partial(fraud_dnn_kernel, mxu_dtype=mxu_dtype),
        out_shape=jax.ShapeDtypeStruct((1, b_pad), jnp.float32),
        grid=(num_tiles,),
        in_specs=[
            x_spec,
            resident(w1c),
            resident(b1c),
            resident(w2c),
            resident(b2c),
            resident(w3_row),
            resident(b3c),
        ],
        out_specs=out_spec,
        compiler_params=pltpu.CompilerParams(dimension_semantics=("parallel",)),
        cost_estimate=cost,
    )(x, w1c, b1c, w2c, b2c, w3_row, b3c)

    # (1, b_pad) lane-dense slab -> (B, 1) column, dropping batch padding.
    return out.reshape(b_pad, 1)[:B]


def init_params(key, input_dim):
    """Deterministic synthetic params with the shapes nn.Linear would create."""
    ks = jax.random.split(key, 6)

    def linear(kw, kb, fan_in, fan_out):
        bound = 1.0 / jnp.sqrt(fan_in)
        w = jax.random.uniform(kw, (fan_in, fan_out), jnp.float32, -bound, bound)
        b = jax.random.uniform(kb, (1, fan_out), jnp.float32, -bound, bound)
        return w, b

    w1, b1 = linear(ks[0], ks[1], input_dim, 128)
    w2, b2 = linear(ks[2], ks[3], 128, 64)
    w3, b3 = linear(ks[4], ks[5], 64, 1)
    return w1, b1, w2, b2, w3, b3


def reference_forward(x_seq, params):
    w1, b1, w2, b2, w3, b3 = params
    x = x_seq.reshape(x_seq.shape[0], -1)
    hi = jax.lax.Precision.HIGHEST
    h1 = jnp.maximum(jnp.dot(x, w1, precision=hi) + b1, 0.0)
    h2 = jnp.maximum(jnp.dot(h1, w2, precision=hi) + b2, 0.0)
    return jax.nn.sigmoid(jnp.dot(h2, w3, precision=hi) + b3)


if __name__ == "__main__":
    key = jax.random.PRNGKey(0)
    k_x, k_p = jax.random.split(key)

    batch = 8
    sequence_length = 30
    num_features = 4
    input_dim = sequence_length * num_features  # 120

    x_seq = jax.random.normal(k_x, (batch, sequence_length, num_features),
                              jnp.float32)
    params = init_params(k_p, input_dim)
    ref = reference_forward(x_seq, params)

    # Full-precision MXU path: matches the f32 reference tightly.
    out_f32 = jax.block_until_ready(
        fraud_dnn_forward(x_seq, params, mxu_dtype=jnp.float32))
    assert out_f32.shape == (batch, 1)
    assert jnp.allclose(out_f32, ref, atol=1e-5, rtol=1e-5)

    # Default performance path: bf16 MXU operands, f32 accumulation
    # (looser tolerance is expected bf16 operand rounding, not a bug).
    out_bf16 = jax.block_until_ready(fraud_dnn_forward(x_seq, params))
    assert out_bf16.shape == (batch, 1)
    assert jnp.allclose(out_bf16, ref, atol=1e-2, rtol=0.0)

    print("KERNEL_OK")
</pallas_src>

<mosaic_0001>
module attributes {stable_mosaic.version = 11 : i64} {
  func.func @fraud_dnn_kernel(%arg0: i32, %arg1: memref<128x120xf32, #tpu.memory_space<vmem>>, %arg2: memref<120x128xf32, #tpu.memory_space<vmem>>, %arg3: memref<1x128xf32, #tpu.memory_space<vmem>>, %arg4: memref<128x64xf32, #tpu.memory_space<vmem>>, %arg5: memref<1x64xf32, #tpu.memory_space<vmem>>, %arg6: memref<1x64xf32, #tpu.memory_space<vmem>>, %arg7: memref<1x1xf32, #tpu.memory_space<vmem>>, %arg8: memref<1x128xf32, #tpu.memory_space<vmem>>) attributes {dimension_semantics = [#tpu.dimension_semantics<parallel>], iteration_bounds = array<i64: 1>, scalar_prefetch = 0 : i64, scratch_operands = 0 : i64, tpu.core_type = #tpu.core_type<tc>, window_params = [{transform_indices = @transform_0, window_bounds = array<i64: 128, 120>}, {pipeline_mode = #tpu.pipeline_mode<synchronous>, transform_indices = @transform_1, window_bounds = array<i64: 120, 128>}, {pipeline_mode = #tpu.pipeline_mode<synchronous>, transform_indices = @transform_2, window_bounds = array<i64: 1, 128>}, {pipeline_mode = #tpu.pipeline_mode<synchronous>, transform_indices = @transform_3, window_bounds = array<i64: 128, 64>}, {pipeline_mode = #tpu.pipeline_mode<synchronous>, transform_indices = @transform_4, window_bounds = array<i64: 1, 64>}, {pipeline_mode = #tpu.pipeline_mode<synchronous>, transform_indices = @transform_5, window_bounds = array<i64: 1, 64>}, {pipeline_mode = #tpu.pipeline_mode<synchronous>, transform_indices = @transform_6, window_bounds = array<i64: 1, 1>}, {transform_indices = @transform_7, window_bounds = array<i64: 1, 128>}]} {
    %c0 = arith.constant 0 : index
    %c0_0 = arith.constant 0 : index
    %0 = vector.load %arg1[%c0, %c0_0] : memref<128x120xf32, #tpu.memory_space<vmem>>, vector<128x120xf32>
    %c0_1 = arith.constant 0 : index
    %c0_2 = arith.constant 0 : index
    %1 = vector.load %arg2[%c0_1, %c0_2] : memref<120x128xf32, #tpu.memory_space<vmem>>, vector<120x128xf32>
    %cst = arith.constant dense<0.000000e+00> : vector<128x128xf32>
    %2 = tpu.matmul %0, %1, %cst {dimension_numbers = #tpu.dot_dimension_numbers<[1], [0], [0], [1], [0, 0, 1, 1], [], []>} : vector<128x120xf32>, vector<120x128xf32>, vector<128x128xf32> -> vector<128x128xf32>
    %c0_3 = arith.constant 0 : index
    %c0_4 = arith.constant 0 : index
    %3 = vector.load %arg3[%c0_3, %c0_4] : memref<1x128xf32, #tpu.memory_space<vmem>>, vector<1x128xf32>
    %4 = vector.broadcast %3 : vector<1x128xf32> to vector<128x128xf32>
    %5 = arith.addf %2, %4 : vector<128x128xf32>
    %cst_5 = arith.constant 0.000000e+00 : f32
    %6 = vector.broadcast %cst_5 : f32 to vector<128x128xf32>
    %7 = arith.maximumf %5, %6 : vector<128x128xf32>
    %c0_6 = arith.constant 0 : index
    %c0_7 = arith.constant 0 : index
    %8 = vector.load %arg4[%c0_6, %c0_7] : memref<128x64xf32, #tpu.memory_space<vmem>>, vector<128x64xf32>
    %cst_8 = arith.constant dense<0.000000e+00> : vector<128x64xf32>
    %9 = tpu.matmul %7, %8, %cst_8 {dimension_numbers = #tpu.dot_dimension_numbers<[1], [0], [0], [1], [0, 0, 1, 1], [], []>} : vector<128x128xf32>, vector<128x64xf32>, vector<128x64xf32> -> vector<128x64xf32>
    %c0_9 = arith.constant 0 : index
    %c0_10 = arith.constant 0 : index
    %10 = vector.load %arg5[%c0_9, %c0_10] : memref<1x64xf32, #tpu.memory_space<vmem>>, vector<1x64xf32>
    %11 = vector.broadcast %10 : vector<1x64xf32> to vector<128x64xf32>
    %12 = arith.addf %9, %11 : vector<128x64xf32>
    %cst_11 = arith.constant 0.000000e+00 : f32
    %13 = vector.broadcast %cst_11 : f32 to vector<128x64xf32>
    %14 = arith.maximumf %12, %13 : vector<128x64xf32>
    %c0_12 = arith.constant 0 : index
    %c0_13 = arith.constant 0 : index
    %15 = vector.load %arg6[%c0_12, %c0_13] : memref<1x64xf32, #tpu.memory_space<vmem>>, vector<1x64xf32>
    %16 = vector.broadcast %15 : vector<1x64xf32> to vector<128x64xf32>
    %17 = arith.mulf %14, %16 : vector<128x64xf32>
    %cst_14 = arith.constant dense<0.000000e+00> : vector<128xf32>
    %18 = vector.multi_reduction <add>, %17, %cst_14 [1] : vector<128x64xf32> to vector<128xf32>
    %19 = vector.shape_cast %18 : vector<128xf32> to vector<1x128xf32>
    %c0_15 = arith.constant 0 : index
    %c0_16 = arith.constant 0 : index
    %20 = vector.load %arg7[%c0_15, %c0_16] : memref<1x1xf32, #tpu.memory_space<vmem>>, vector<1x1xf32>
    %21 = vector.broadcast %20 : vector<1x1xf32> to vector<1x128xf32>
    %22 = arith.addf %19, %21 : vector<1x128xf32>
    %23 = arith.negf %22 : vector<1x128xf32>
    %24 = math.exp %23 : vector<1x128xf32>
    %cst_17 = arith.constant 1.000000e+00 : f32
    %25 = vector.broadcast %cst_17 : f32 to vector<1x128xf32>
    %26 = arith.addf %25, %24 : vector<1x128xf32>
    %27 = arith.divf %25, %26 : vector<1x128xf32>
    %c0_18 = arith.constant 0 : index
    %c0_19 = arith.constant 0 : index
    %28 = vector.load %arg8[%c0_18, %c0_19] : memref<1x128xf32, #tpu.memory_space<vmem>>, vector<1x128xf32>
    tpu.vector_store %arg8[%c0_18, %c0_19], %27 {strides = array<i32>} : memref<1x128xf32, #tpu.memory_space<vmem>>, vector<1x128xf32>,
    return
  }
  func.func @transform_0(%arg0: i32) -> (i32, i32) {
    %c0_i32 = arith.constant 0 : i32
    %c0_i32_0 = arith.constant 0 : i32
    return %arg0, %c0_i32 : i32, i32
  }
  func.func @transform_1(%arg0: i32) -> (i32, i32) {
    %c0_i32 = arith.constant 0 : i32
    %c0_i32_0 = arith.constant 0 : i32
    %c0_i32_1 = arith.constant 0 : i32
    return %c0_i32, %c0_i32_0 : i32, i32
  }
  func.func @transform_2(%arg0: i32) -> (i32, i32) {
    %c0_i32 = arith.constant 0 : i32
    %c0_i32_0 = arith.constant 0 : i32
    %c0_i32_1 = arith.constant 0 : i32
    return %c0_i32, %c0_i32_0 : i32, i32
  }
  func.func @transform_3(%arg0: i32) -> (i32, i32) {
    %c0_i32 = arith.constant 0 : i32
    %c0_i32_0 = arith.constant 0 : i32
    %c0_i32_1 = arith.constant 0 : i32
    return %c0_i32, %c0_i32_0 : i32, i32
  }
  func.func @transform_4(%arg0: i32) -> (i32, i32) {
    %c0_i32 = arith.constant 0 : i32
    %c0_i32_0 = arith.constant 0 : i32
    %c0_i32_1 = arith.constant 0 : i32
    return %c0_i32, %c0_i32_0 : i32, i32
  }
  func.func @transform_5(%arg0: i32) -> (i32, i32) {
    %c0_i32 = arith.constant 0 : i32
    %c0_i32_0 = arith.constant 0 : i32
    %c0_i32_1 = arith.constant 0 : i32
    return %c0_i32, %c0_i32_0 : i32, i32
  }
  func.func @transform_6(%arg0: i32) -> (i32, i32) {
    %c0_i32 = arith.constant 0 : i32
    %c0_i32_0 = arith.constant 0 : i32
    %c0_i32_1 = arith.constant 0 : i32
    return %c0_i32, %c0_i32_0 : i32, i32
  }
  func.func @transform_7(%arg0: i32) -> (i32, i32) {
    %c0_i32 = arith.constant 0 : i32
    %c0_i32_0 = arith.constant 0 : i32
    return %c0_i32, %arg0 : i32, i32
  }
}

</mosaic_0001>

<bundles_post_ra>
// kernel: tpu_custom_call.1
= control target key start
LH: loop header
LB: loop body
LE: loop exit
PB: predicated region body
PF: predicated region fallthrough
CT: control target
= control target key end

     0   :  { %s1488_s0 = inlined_call_operand.vmem [shape: f32[128,120], index: 0, kind: input, shape index: {}]   ;;  %s1489_s1 = inlined_call_operand.vmem [shape: f32[120,128], index: 1, kind: input, shape index: {}]   ;;  %s1490_s2 = inlined_call_operand.vmem [shape: f32[1,128], index: 2, kind: input, shape index: {}]   ;;  %s1491_s3 = inlined_call_operand.vmem [shape: f32[128,64], index: 3, kind: input, shape index: {}]   ;;  %s1492_s4 = inlined_call_operand.vmem [shape: f32[1,64], index: 4, kind: input, shape index: {}]   ;;  %s1493_s5 = inlined_call_operand.vmem [shape: f32[1,64], index: 5, kind: input, shape index: {}]   ;;  %s1494_s6 = inlined_call_operand.<no memory space> [shape: f32[1,1], index: 6, kind: input, shape index: {}]   ;;  %s1495_s7 = inlined_call_operand.hbm [shape: f32[1,128], index: 7, kind: output, shape index: {}]  }
   0x1   :  { %v12_v0 = vstv %s1494_s6 }
   0x2   :  { %13 = vst [vmem:[#allocation2] sm:$0x1] %v12_v0 }
   0x3   :  { %v45_v1 = vld [vmem:[%s1489_s1] sm:$0xff]  ;;  %v46_v2 = vld [vmem:[%s1489_s1 + $0x8] sm:$0xff]  ;;  %v47_v3 = vld [vmem:[%s1489_s1 + $0x10] sm:$0xff]  ;;  %vm67_vm0 = vcmask 982016  }
   0x4   :  { %v1006_v4 = vpack.c.bf16 %v46_v2, %v45_v1  ;;  %v48_v5 = vld [vmem:[%s1489_s1 + $0x18] sm:$0xff]  ;;  %v49_v7 = vld [vmem:[%s1489_s1 + $0x20] sm:$0xff]  ;;  %v50_v8 = vld [vmem:[%s1489_s1 + $0x28] sm:$0xff] }
   0x5   :  { %v1010_v6 = vpack.c.bf16 %v48_v5, %v47_v3  ;;  %v1014_v9 = vpack.c.bf16 %v50_v8, %v49_v7  ;;  %v29_v10 = vld [vmem:[%s1488_s0] sm:$0xff]  ;;  %v51_v11 = vld [vmem:[%s1489_s1 + $0x30] sm:$0xff]  ;;  %v52_v12 = vld [vmem:[%s1489_s1 + $0x38] sm:$0xff] }
   0x6   :  { %1007 = vmatprep.subr.bf16.mxu0 %v1006_v4  ;;  %926 = vmatprep.mubr.msk.f32.mxu0 %vm67_vm0, %v29_v10  ;;  %v1018_v13 = vpack.c.bf16 %v52_v12, %v51_v11  ;;  %v53_v14 = vld [vmem:[%s1489_s1 + $0x40] sm:$0xff]  ;;  %v54_v15 = vld [vmem:[%s1489_s1 + $0x48] sm:$0xff]  ;;  %v279_v19 = vld [vmem:[%s1491_s3 + $0x10] sm:$0xff] }
   0x7   :  { %1009 = vmatpush3.bf16.msra.mxu0 %v1006_v4  ;;  %v277_v16 = vld [vmem:[%s1491_s3] sm:$0xff]  ;;  %v278_v17 = vld [vmem:[%s1491_s3 + $0x8] sm:$0xff]  ;;  %v280_v20 = vld [vmem:[%s1491_s3 + $0x18] sm:$0xff]  ;;  %v1022_v24 = vpack.c.bf16 %v54_v15, %v53_v14 }
   0x8   :  { %1011 = vmatprep.subr.bf16.mxu0 %v1010_v6  ;;  %v1034_v18 = vpack.c.bf16 %v278_v17, %v277_v16  ;;  %v1038_v21 = vpack.c.bf16 %v280_v20, %v279_v19  ;;  %v281_v22 = vld [vmem:[%s1491_s3 + $0x20] sm:$0xff]  ;;  %v282_v23 = vld [vmem:[%s1491_s3 + $0x28] sm:$0xff]  ;;  %v55_v25 = vld [vmem:[%s1489_s1 + $0x50] sm:$0xff] }
   0x9   :  { %v56_v26 = vld [vmem:[%s1489_s1 + $0x58] sm:$0xff]  ;;  %v1042_v27 = vpack.c.bf16 %v282_v23, %v281_v22 }
   0xa   :  { %1035 = vmatprep.subr.bf16.mxu1 %v1034_v18 }
   0xb   :  { %1013 = vmatpush3.bf16.msra.mxu0 %v1010_v6  ;;  %1037 = vmatpush3.bf16.msra.mxu1 %v1034_v18 }
   0xc   :  { %1015 = vmatprep.subr.bf16.mxu0 %v1014_v9  ;;  %1039 = vmatprep.subr.bf16.mxu1 %v1038_v21 }
   0xf   :  { %1017 = vmatpush3.bf16.msra.mxu0 %v1014_v9 }
  0x10   :  { %1019 = vmatprep.subr.bf16.mxu0 %v1018_v13 }
  0x11   :  { %14 = vsyncpa [#allocation4], 0  ;;  %v283_v28 = vld [vmem:[%s1491_s3 + $0x30] sm:$0xff]  ;;  %v284_v29 = vld [vmem:[%s1491_s3 + $0x38] sm:$0xff]  ;;  %v1026_v30 = vpack.c.bf16 %v56_v26, %v55_v25  ;;  %1041 = vmatpush3.bf16.msra.mxu1 %v1038_v21  ;;  %vm484_vm1 = vcmask 523264   ;;  %vm682_vm2 = vcmask 130112  }
  0x12   :  { %v57_v31 = vld [vmem:[%s1489_s1 + $0x60] sm:$0xff]  ;;  %v58_v32 = vld [vmem:[%s1489_s1 + $0x68] sm:$0xff]  ;;  %1043 = vmatprep.subr.bf16.mxu1 %v1042_v27  ;;  %v1046_v33 = vpack.c.bf16 %v284_v29, %v283_v28  ;;  %v287_v38 = vld [vmem:[%s1491_s3 + $0x50] sm:$0xff]  ;;  %vm689_vm3 = vcmask 195712   ;;  %vm696_vm4 = vcmask 261312   ;;  %vm703_vm5 = vcmask 326912  }
  0x13   :  { %1021 = vmatpush3.bf16.msra.mxu0 %v1018_v13  ;;  %v285_v34 = vld [vmem:[%s1491_s3 + $0x40] sm:$0xff]  ;;  %v286_v35 = vld [vmem:[%s1491_s3 + $0x48] sm:$0xff]  ;;  %v1030_v36 = vpack.c.bf16 %v58_v32, %v57_v31  ;;  %v288_v39 = vld [vmem:[%s1491_s3 + $0x58] sm:$0xff]  ;;  %vm710_vm6 = vcmask 392512   ;;  %vm717_vm7 = vcmask 458112   ;;  %vm724_vm8 = vcmask 523712  }
  0x14   :  { %1023 = vmatprep.subr.bf16.mxu0 %v1022_v24  ;;  %v1050_v37 = vpack.c.bf16 %v286_v35, %v285_v34  ;;  %v59_v40 = vld [vmem:[%s1489_s1 + $0x70] sm:$0xff]  ;;  %v1054_v41 = vpack.c.bf16 %v288_v39, %v287_v38  ;;  %v289_v42 = vld [vmem:[%s1491_s3 + $0x60] sm:$0xff]  ;;  %v290_v43 = vld [vmem:[%s1491_s3 + $0x68] sm:$0xff]  ;;  %vm731_vm9 = vcmask 589312   ;;  %vm738_vm10 = vcmask 654912  }
  0x15   :  { %1045 = vmatpush3.bf16.msra.mxu1 %v1042_v27  ;;  %v30_v44 = vld [vmem:[%s1488_s0 + $0x8] sm:$0xff]  ;;  %v31_v45 = vld [vmem:[%s1488_s0 + $0x10] sm:$0xff]  ;;  %v1058_v46 = vpack.c.bf16 %v290_v43, %v289_v42  ;;  %v32_v47 = vld [vmem:[%s1488_s0 + $0x18] sm:$0xff]  ;;  %vm745_vm11 = vcmask 720512   ;;  %vm752_vm12 = vcmask 786112   ;;  %vm759_vm13 = vcmask 851712  }
  0x16   :  { %1047 = vmatprep.subr.bf16.mxu1 %v1046_v33  ;;  %v33_v48 = vld [vmem:[%s1488_s0 + $0x20] sm:$0xff]  ;;  %v34_v49 = vld [vmem:[%s1488_s0 + $0x28] sm:$0xff]  ;;  %v35_v50 = vld [vmem:[%s1488_s0 + $0x30] sm:$0xff]  ;;  %vm766_vm14 = vcmask 917312   ;;  %vm773_vm15 = vcmask 982912  }
  0x17   :  { %1025 = vmatpush3.bf16.msra.mxu0 %v1022_v24  ;;  %v36_v51 = vld [vmem:[%s1488_s0 + $0x38] sm:$0xff]  ;;  %v37_v52 = vld [vmem:[%s1488_s0 + $0x40] sm:$0xff]  ;;  %v38_v53 = vld [vmem:[%s1488_s0 + $0x48] sm:$0xff] }
  0x18   :  { %1027 = vmatprep.subr.bf16.mxu0 %v1026_v30  ;;  %v39_v54 = vld [vmem:[%s1488_s0 + $0x50] sm:$0xff]  ;;  %v40_v55 = vld [vmem:[%s1488_s0 + $0x58] sm:$0xff]  ;;  %v41_v56 = vld [vmem:[%s1488_s0 + $0x60] sm:$0xff] }
  0x19   :  { %1049 = vmatpush3.bf16.msra.mxu1 %v1046_v33  ;;  %v42_v57 = vld [vmem:[%s1488_s0 + $0x68] sm:$0xff]  ;;  %v43_v58 = vld [vmem:[%s1488_s0 + $0x70] sm:$0xff]  ;;  %v44_v59 = vld [vmem:[%s1488_s0 + $0x78] sm:$0xff] }
  0x1a   :  { %1051 = vmatprep.subr.bf16.mxu1 %v1050_v37  ;;  %v291_v60 = vld [vmem:[%s1491_s3 + $0x70] sm:$0xff]  ;;  %v292_v61 = vld [vmem:[%s1491_s3 + $0x78] sm:$0xff]  ;;  %v798_v63 = vld [vmem:[%s1490_s2] ss:$0 sm:$0xff] }
  0x1b   :  { %1029 = vmatpush3.bf16.msra.mxu0 %v1026_v30  ;;  %v1062_v62 = vpack.c.bf16 %v292_v61, %v291_v60 }
  0x1c   :  { %1031 = vmatprep.subr.bf16.mxu0 %v1030_v36 }
  0x1d   :  { %1053 = vmatpush3.bf16.msra.mxu1 %v1050_v37 }
  0x1e   :  { %1055 = vmatprep.subr.bf16.mxu1 %v1054_v41 }
  0x1f   :  { %1033 = vmatpush3.bf16.msra.mxu0 %v1030_v36 }
  0x20   :  { %924 = vmatprep.subr.mxu0 %v59_v40 }
  0x21   :  { %1057 = vmatpush3.bf16.msra.mxu1 %v1054_v41 }
  0x22   :  { %1059 = vmatprep.subr.bf16.mxu1 %v1058_v46 }
  0x23   :  { %925 = vmatpush3.msra.mxu0 %v59_v40 }
  0x24   :  { %927 = vmatmul.mubr.msk.f32.vlgmr.msra.gmra.mrb[0].mxu0 %vm67_vm0, %v30_v44 }
  0x25   :  { %929 = vmatprep.mubr.msk.f32.mxu0 %vm67_vm0, %v31_v45  ;;  %1061 = vmatpush3.bf16.msra.mxu1 %v1058_v46 }
  0x26   :  { %1063 = vmatprep.subr.bf16.mxu1 %v1062_v62 }
  0x28   :  { %930 = vmatmul.mubr.msk.f32.gmra.mrb[2].mxu0 %vm67_vm0, %v32_v47 }
  0x29   :  { %932 = vmatprep.mubr.msk.f32.mxu0 %vm67_vm0, %v33_v48  ;;  %1065 = vmatpush3.bf16.msra.mxu1 %v1062_v62  ;;  %v1158_v48 = vmov 0  }
  0x2a   :  { %1068 = vset.pattern.permute.xlu1 %v1158_v48  ;;  %1069 = vset.pattern.permute.xlu0 %v1158_v48 }
  0x2c   :  { %933 = vmatmul.mubr.msk.f32.gmra.mrb[4].mxu0 %vm67_vm0, %v34_v49  ;;  %v1366_v49 = vld [vmem:[%s1492_s4] ss:$0 sm:$0xff]  ;;  %s1159_s4 = smov [#allocation3]  }
  0x2d   :  { %935 = vmatprep.mubr.msk.f32.mxu0 %vm67_vm0, %v35_v50 }
  0x30   :  { %936 = vmatmul.mubr.msk.f32.gmra.mrb[6].mxu0 %vm67_vm0, %v36_v51 }
  0x31   :  { %938 = vmatprep.mubr.msk.f32.mxu0 %vm67_vm0, %v37_v52 }
  0x34   :  { %939 = vmatmul.mubr.msk.f32.gmra.mrb[8].mxu0 %vm67_vm0, %v38_v53 }
  0x35   :  { %941 = vmatprep.mubr.msk.f32.mxu0 %vm67_vm0, %v39_v54  ;;  %v1373_v54 = vld [vmem:[%s1493_s5] ss:$0 sm:$0xff]  ;;  %s790_s5 = sshll.u32 %s1159_s4, 4  ;;  %s791_s5 = int_to_ptr.vmem [resolvable:$true] %s790_s5 }
  0x36   :  { %s1134_s25 = scalar_lea.vmem %s791_s5, 16  ;;  %s1138_s26 = scalar_lea.vmem %s791_s5, 32 }
  0x37   :  { %p1135_p0 = scmp.ne.s32.totalorder %s791_s5, %s1134_s25  ;;  %p1139_p1 = scmp.lt.s32.totalorder %s791_s5, %s791_s5 }
  0x38   :  { %942 = vmatmul.mubr.msk.f32.gmra.mrb[10].mxu0 %vm67_vm0, %v40_v55  ;;  %p1140_p2 = scmp.lt.s32.totalorder %s1138_s26, %s1134_s25 }
  0x39   :  { %944 = vmatprep.mubr.msk.f32.mxu0 %vm67_vm0, %v41_v56 }
  0x3a   :  { %p1141_p3 = por %p1140_p2, %p1139_p1 }
  0x3c   :  { %945 = vmatmul.mubr.msk.f32.gmra.mrb[12].mxu0 %vm67_vm0, %v42_v57  ;;  %p1142_p4 = pnand %p1141_p3, %p1135_p0 }
  0x3d   :  { %947 = vmatprep.mubr.msk.f32.mxu0 %vm67_vm0, %v43_v58 }
  0x40   :  { %948 = vmatmul.mubr.msk.f32.gmra.mrb[14].mxu0 %vm67_vm0, %v44_v59  ;;  %vm780_vm0 = vcmask 1048512  }
  0xf7   :  { %v928_v0 = vpop.f32.mrb[0].mxu0 }
  0xf8   :  { %v188_v1 = vadd.f32 %v928_v0, %v798_v63  ;;  %v182_v2 = vpop.f32.mrb[1].mxu0 }
  0xf9   :  { %v183_v3 = vadd.f32 %v798_v63, %v182_v2 }
  0xfa   :  { %v262_v6 = vmax.f32 %v188_v1, 0.0 }
  0xfb   :  { %v931_v4 = vpop.f32.mrb[2].mxu0  ;;  %v261_v5 = vmax.f32 %v183_v3, 0.0 }
  0xfc   :  { %v198_v7 = vadd.f32 %v931_v4, %v798_v63  ;;  %v192_v8 = vpop.f32.mrb[3].mxu0 }
  0xfd   :  { %v193_v9 = vadd.f32 %v798_v63, %v192_v8  ;;  %982 = vmatprep.mubr.f32.mxu1 %v261_v5 }
  0xfe   :  { %983 = vmatmul.mubr.f32.vlgmr.msra.gmra.mrb[0].mxu1 %v262_v6  ;;  %v264_v12 = vmax.f32 %v198_v7, 0.0 }
  0xff   :  { %v263_v10 = vmax.f32 %v193_v9, 0.0  ;;  %v934_v11 = vpop.f32.mrb[4].mxu0 }
 0x100   :  { %v208_v13 = vadd.f32 %v934_v11, %v798_v63  ;;  %v202_v14 = vpop.f32.mrb[5].mxu0 }
 0x101   :  { %v203_v15 = vadd.f32 %v798_v63, %v202_v14  ;;  %985 = vmatprep.mubr.f32.mxu1 %v263_v10 }
 0x102   :  { %v266_v16 = vmax.f32 %v208_v13, 0.0  ;;  %986 = vmatmul.mubr.f32.gmra.mrb[2].mxu1 %v264_v12 }
 0x103   :  { %v265_v17 = vmax.f32 %v203_v15, 0.0  ;;  %v937_v18 = vpop.f32.mrb[6].mxu0 }
 0x104   :  { %v218_v19 = vadd.f32 %v937_v18, %v798_v63  ;;  %v212_v20 = vpop.f32.mrb[7].mxu0 }
 0x105   :  { %v213_v21 = vadd.f32 %v798_v63, %v212_v20  ;;  %988 = vmatprep.mubr.f32.mxu1 %v265_v17 }
 0x106   :  { %v268_v22 = vmax.f32 %v218_v19, 0.0  ;;  %989 = vmatmul.mubr.f32.gmra.mrb[4].mxu1 %v266_v16 }
 0x107   :  { %v267_v23 = vmax.f32 %v213_v21, 0.0  ;;  %v940_v24 = vpop.f32.mrb[8].mxu0 }
 0x108   :  { %v228_v25 = vadd.f32 %v940_v24, %v798_v63  ;;  %v222_v26 = vpop.f32.mrb[9].mxu0 }
 0x109   :  { %991 = vmatprep.mubr.f32.mxu1 %v267_v23  ;;  %v223_v27 = vadd.f32 %v798_v63, %v222_v26 }
 0x10a   :  { %992 = vmatmul.mubr.f32.gmra.mrb[6].mxu1 %v268_v22  ;;  %v270_v28 = vmax.f32 %v228_v25, 0.0 }
 0x10b   :  { %v269_v29 = vmax.f32 %v223_v27, 0.0  ;;  %v943_v30 = vpop.f32.mrb[10].mxu0 }
 0x10c   :  { %v238_v31 = vadd.f32 %v943_v30, %v798_v63  ;;  %v232_v32 = vpop.f32.mrb[11].mxu0 }
 0x10d   :  { %994 = vmatprep.mubr.f32.mxu1 %v269_v29  ;;  %v233_v33 = vadd.f32 %v798_v63, %v232_v32 }
 0x10e   :  { %v272_v34 = vmax.f32 %v238_v31, 0.0  ;;  %995 = vmatmul.mubr.f32.gmra.mrb[8].mxu1 %v270_v28 }
 0x10f   :  { %v271_v35 = vmax.f32 %v233_v33, 0.0  ;;  %v946_v36 = vpop.f32.mrb[12].mxu0 }
 0x110   :  { %v248_v37 = vadd.f32 %v946_v36, %v798_v63  ;;  %v242_v38 = vpop.f32.mrb[13].mxu0 }
 0x111   :  { %v243_v39 = vadd.f32 %v798_v63, %v242_v38  ;;  %997 = vmatprep.mubr.f32.mxu1 %v271_v35 }
 0x112   :  { %v274_v40 = vmax.f32 %v248_v37, 0.0  ;;  %998 = vmatmul.mubr.f32.gmra.mrb[10].mxu1 %v272_v34 }
 0x113   :  { %v273_v41 = vmax.f32 %v243_v39, 0.0  ;;  %v949_v42 = vpop.f32.mrb[14].mxu0 }
 0x114   :  { %v258_v43 = vadd.f32 %v949_v42, %v798_v63  ;;  %v252_v44 = vpop.f32.mrb[15].mxu0 }
 0x115   :  { %1000 = vmatprep.mubr.f32.mxu1 %v273_v41  ;;  %v253_v45 = vadd.f32 %v798_v63, %v252_v44 }
 0x116   :  { %v276_v46 = vmax.f32 %v258_v43, 0.0  ;;  %1001 = vmatmul.mubr.f32.gmra.mrb[12].mxu1 %v274_v40 }
 0x117   :  { %v275_v47 = vmax.f32 %v253_v45, 0.0 }
 0x119   :  { %1003 = vmatprep.mubr.f32.mxu1 %v275_v47 }
 0x11a   :  { %1004 = vmatmul.mubr.f32.gmra.mrb[14].mxu1 %v276_v46 }
 0x1d1   :  { %v984_v50 = vpop.f32.mrb[0].mxu1 }
 0x1d2   :  { %v372_v51 = vadd.f32 %v984_v50, %v1366_v49  ;;  %v366_v52 = vpop.f32.mrb[1].mxu1 }
 0x1d3   :  { %v367_v53 = vadd.f32 %v1366_v49, %v366_v52 }
 0x1d4   :  { %v446_v55 = vmax.f32 %v372_v51, 0.0 }
 0x1d5   :  { %v445_v56 = vmax.f32 %v367_v53, 0.0  ;;  %v987_v57 = vpop.f32.mrb[2].mxu1 }
 0x1d6   :  { %v382_v58 = vadd.f32 %v987_v57, %v1366_v49  ;;  %v376_v59 = vpop.f32.mrb[3].mxu1  ;;  %v469_v60 = vmul.f32 %v1373_v54, %v446_v55 }
 0x1d7   :  { %v377_v61 = vadd.f32 %v1366_v49, %v376_v59  ;;  %v468_v0 = vmul.f32 %v1373_v54, %v445_v56  ;;  %v533_v56 = vld [vmem:[#allocation2] sm:$0x1] }
 0x1d8   :  { %v448_v62 = vmax.f32 %v382_v58, 0.0  ;;  %v488_v63 = vsel %vm484_vm1, %v469_v60, 0.0 }
 0x1d9   :  { %v447_v1 = vmax.f32 %v377_v61, 0.0  ;;  %489 = vadd.xlane.f32.xlu0 %v488_v63  ;;  %v990_v2 = vpop.f32.mrb[4].mxu1  ;;  %v485_v9 = vsel %vm484_vm1, %v468_v0, 0.0 }
 0x1da   :  { %v392_v3 = vadd.f32 %v990_v2, %v1366_v49  ;;  %v386_v4 = vpop.f32.mrb[5].mxu1  ;;  %v471_v5 = vmul.f32 %v1373_v54, %v448_v62 }
 0x1db   :  { %v387_v6 = vadd.f32 %v1366_v49, %v386_v4  ;;  %v470_v10 = vmul.f32 %v1373_v54, %v447_v1 }
 0x1dc   :  { %v450_v7 = vmax.f32 %v392_v3, 0.0  ;;  %v494_v8 = vsel %vm484_vm1, %v471_v5, 0.0 }
 0x1dd   :  { %v449_v11 = vmax.f32 %v387_v6, 0.0  ;;  %495 = vadd.xlane.f32.xlu1 %v494_v8  ;;  %486 = vadd.xlane.f32.xlu0 %v485_v9  ;;  %v993_v12 = vpop.f32.mrb[6].mxu1  ;;  %v491_v18 = vsel %vm484_vm1, %v470_v10, 0.0  ;;  %v539_v10 = vlaneseq }
 0x1de   :  { %v402_v13 = vadd.f32 %v993_v12, %v1366_v49  ;;  %v396_v14 = vpop.f32.mrb[7].mxu1  ;;  %v473_v19 = vmul.f32 %v1373_v54, %v450_v7 }
 0x1df   :  { %v397_v15 = vadd.f32 %v1366_v49, %v396_v14  ;;  %v472_v16 = vmul.f32 %v1373_v54, %v449_v11 }
 0x1e0   :  { %v452_v17 = vmax.f32 %v402_v13, 0.0  ;;  %v500_v28 = vsel %vm484_vm1, %v473_v19, 0.0  ;;  %v1421_v13 = vshrl.u32 %v539_v10, 7 }
 0x1e1   :  { %492 = vadd.xlane.f32.xlu1 %v491_v18  ;;  %v451_v20 = vmax.f32 %v397_v15, 0.0  ;;  %v497_v21 = vsel %vm484_vm1, %v472_v16, 0.0  ;;  %v996_v22 = vpop.f32.mrb[8].mxu1 }
 0x1e2   :  { %498 = vadd.xlane.f32.xlu0 %v497_v21  ;;  %v412_v23 = vadd.f32 %v996_v22, %v1366_v49  ;;  %v475_v24 = vmul.f32 %v1373_v54, %v452_v17  ;;  %v406_v25 = vpop.f32.mrb[9].mxu1  ;;  %v541_v15 = vsub.s32 0, %v1421_v13 }
 0x1e3   :  { %v407_v26 = vadd.f32 %v1366_v49, %v406_v25  ;;  %v474_v27 = vmul.f32 %v1373_v54, %v451_v20 }
 0x1e4   :  { %v454_v29 = vmax.f32 %v412_v23, 0.0  ;;  %v506_v30 = vsel %vm484_vm1, %v475_v24, 0.0 }
 0x1e5   :  { %501 = vadd.xlane.f32.xlu1 %v500_v28  ;;  %v999_v31 = vpop.f32.mrb[10].mxu1  ;;  %v453_v34 = vmax.f32 %v407_v26, 0.0  ;;  %v503_v35 = vsel %vm484_vm1, %v474_v27, 0.0 }
 0x1e6   :  { %507 = vadd.xlane.f32.xlu0 %v506_v30  ;;  %v422_v32 = vadd.f32 %v999_v31, %v1366_v49  ;;  %v416_v33 = vpop.f32.mrb[11].mxu1  ;;  %v477_v37 = vmul.f32 %v1373_v54, %v454_v29 }
 0x1e7   :  { %v417_v36 = vadd.f32 %v1366_v49, %v416_v33  ;;  %v476_v45 = vmul.f32 %v1373_v54, %v453_v34 }
 0x1e8   :  { %v456_v38 = vmax.f32 %v422_v32, 0.0  ;;  %v512_v43 = vsel %vm484_vm1, %v477_v37, 0.0 }
 0x1e9   :  { %v1002_v39 = vpop.f32.mrb[12].mxu1  ;;  %v455_v42 = vmax.f32 %v417_v36, 0.0  ;;  %v509_v51 = vsel %vm484_vm1, %v476_v45, 0.0 }
 0x1ea   :  { %504 = vadd.xlane.f32.xlu0 %v503_v35  ;;  %v426_v40 = vpop.f32.mrb[13].mxu1  ;;  %v479_v41 = vmul.f32 %v1373_v54, %v456_v38  ;;  %v432_v44 = vadd.f32 %v1002_v39, %v1366_v49 }
 0x1eb   :  { %v427_v52 = vadd.f32 %v1366_v49, %v426_v40  ;;  %v478_v53 = vmul.f32 %v1373_v54, %v455_v42 }
 0x1ec   :  { %v518_v46 = vsel %vm484_vm1, %v479_v41, 0.0  ;;  %v458_v50 = vmax.f32 %v432_v44, 0.0 }
 0x1ed   :  { %v1005_v47 = vpop.f32.mrb[14].mxu1  ;;  %v457_v55 = vmax.f32 %v427_v52, 0.0  ;;  %v515_v57 = vsel %vm484_vm1, %v478_v53, 0.0 }
 0x1ee   :  { %513 = vadd.xlane.f32.xlu0 %v512_v43  ;;  %v436_v48 = vpop.f32.mrb[15].mxu1  ;;  %v481_v59 = vmul.f32 %v1373_v54, %v458_v50  ;;  %v442_v60 = vadd.f32 %v1005_v47, %v1366_v49  ;;  %v1436_v50 = vand.u32 127, %v539_v10 }
 0x1ef   :  { %v437_v58 = vadd.f32 %v1366_v49, %v436_v48  ;;  %v480_v63 = vmul.f32 %v1373_v54, %v457_v55 }
 0x1f0   :  { %v524_v62 = vsel %vm484_vm1, %v481_v59, 0.0  ;;  %v460_v0 = vmax.f32 %v442_v60, 0.0  ;;  %v677_v59 = vadd.s32 4294967288, %v1436_v50 }
 0x1f1   :  { %v459_v61 = vmax.f32 %v437_v58, 0.0  ;;  %v521_v1 = vsel %vm484_vm1, %v480_v63, 0.0 }
 0x1f2   :  { %510 = vadd.xlane.f32.xlu0 %v509_v51  ;;  %v483_v4 = vmul.f32 %v1373_v54, %v460_v0 }
 0x1f3   :  { %v482_v2 = vmul.f32 %v1373_v54, %v459_v61 }
 0x1f4   :  { %v530_v5 = vsel %vm484_vm1, %v483_v4, 0.0 }
 0x1f5   :  { %v527_v3 = vsel %vm484_vm1, %v482_v2, 0.0 }
 0x1f6   :  { %536 = vperm.xlu1 %1068, %v533_v56   ;;  %516 = vadd.xlane.f32.xlu0 %v515_v57 }
 0x1fa   :  { %525 = vadd.xlane.f32.xlu0 %v524_v62 }
 0x1fe   :  { %522 = vadd.xlane.f32.xlu0 %v521_v1 }
 0x202   :  { %528 = vadd.xlane.f32.xlu0 %v527_v3  ;;  %v684_v3 = vadd.s32 4294967280, %v1436_v50 }
 0x206   :  { %531 = vadd.xlane.f32.xlu0 %v530_v5 }
 0x21a   :  { %519 = vadd.xlane.f32.xlu1 %v518_v46 }
 0x266   :  { %v490_v49 = vpop.xlane.xlu0 %489 }
 0x26a   :  { %v496_v6 = vpop.xlane.xlu1 %495  ;;  %v487_v7 = vpop.xlane.xlu0 %486 }
 0x26e   :  { %v493_v8 = vpop.xlane.xlu1 %492 }
 0x26f   :  { %v499_v9 = vpop.xlane.xlu0 %498 }
 0x272   :  { %v502_v12 = vpop.xlane.xlu1 %501 }
 0x273   :  { %v508_v11 = vpop.xlane.xlu0 %507 }
 0x276   :  { %v537_v16 = vpop.permute.xlu1 %536 }
 0x277   :  { %v505_v14 = vpop.xlane.xlu0 %504  ;;  %v1424_v17 = vrot.slane %v537_v16, %v541_v15 }
 0x279   :  { %v543_v18 = vadd.f32 %v1424_v17, %v487_v7  ;;  %v544_v20 = vadd.f32 %v1424_v17, %v490_v49  ;;  %v545_v21 = vadd.f32 %v1424_v17, %v493_v8  ;;  %v546_v26 = vadd.f32 %v1424_v17, %v496_v6 }
 0x27a   :  { %v547_v27 = vadd.f32 %v1424_v17, %v499_v9  ;;  %v548_v30 = vadd.f32 %v1424_v17, %v502_v12  ;;  %v549_v32 = vadd.f32 %v1424_v17, %v505_v14  ;;  %v550_v38 = vadd.f32 %v1424_v17, %v508_v11 }
 0x27b   :  { %v514_v54 = vpop.xlane.xlu0 %513  ;;  %v817_v22 = vmul.f32 -1.442695, %v543_v18  ;;  %v818_v23 = vmul.f32 -1.442695, %v544_v20  ;;  %v819_v25 = vmul.f32 -1.442695, %v545_v21  ;;  %v675_v6 = vsub.s32 %v1436_v50, %v1421_v13 }
 0x27c   :  { %v820_v29 = vmul.f32 -1.442695, %v546_v26  ;;  %v821_v31 = vmul.f32 -1.442695, %v547_v27  ;;  %v822_v34 = vmul.f32 -1.442695, %v548_v30  ;;  %v552_v51 = vadd.f32 %v1424_v17, %v514_v54 }
 0x27d   :  { %1070 = vpow2.f32 %v817_v22  ;;  %v823_v37 = vmul.f32 -1.442695, %v549_v32  ;;  %v824_v44 = vmul.f32 -1.442695, %v550_v38  ;;  %v680_v7 = vsub.s32 %v677_v59, %v1421_v13 }
 0x27e   :  { %1072 = vpow2.f32 %v818_v23  ;;  %v826_v60 = vmul.f32 -1.442695, %v552_v51  ;;  %v687_v12 = vsub.s32 %v684_v3, %v1421_v13  ;;  %v691_v14 = vadd.s32 4294967272, %v1436_v50 }
 0x27f   :  { %v511_v19 = vpop.xlane.xlu0 %510  ;;  %1074 = vpow2.f32 %v819_v25  ;;  %v698_v22 = vadd.s32 4294967264, %v1436_v50  ;;  %v740_v3 = vadd.s32 4294967216, %v1436_v50 }
 0x280   :  { %1076 = vpow2.f32 %v820_v29  ;;  %v551_v42 = vadd.f32 %v1424_v17, %v511_v19 }
 0x281   :  { %1078 = vpow2.f32 %v821_v31 }
 0x282   :  { %1080 = vpow2.f32 %v822_v34  ;;  %v825_v47 = vmul.f32 -1.442695, %v551_v42  ;;  %v701_v34 = vsub.s32 %v698_v22, %v1421_v13 }
 0x283   :  { %v517_v24 = vpop.xlane.xlu0 %516  ;;  %1082 = vpow2.f32 %v823_v37  ;;  %v712_v37 = vadd.s32 4294967248, %v1436_v50 }
 0x284   :  { %v553_v46 = vadd.f32 %v1424_v17, %v517_v24 }
 0x286   :  { %v827_v53 = vmul.f32 -1.442695, %v553_v46 }
 0x287   :  { %v526_v28 = vpop.xlane.xlu0 %525  ;;  %v1071_v33 = vpop.eup %1070 }
 0x288   :  { %v1073_v36 = vpop.eup %1072  ;;  %v607_v39 = vadd.f32 1.0, %v1071_v33  ;;  %v556_v55 = vadd.f32 %v1424_v17, %v526_v28  ;;  %v694_v28 = vsub.s32 %v691_v14, %v1421_v13 }
 0x289   :  { %v1075_v40 = vpop.eup %1074  ;;  %v608_v41 = vadd.f32 1.0, %v1073_v36 }
 0x28a   :  { %v609_v45 = vadd.f32 1.0, %v1075_v40  ;;  %1084 = vrcp.f32 %v607_v39  ;;  %v1077_v48 = vpop.eup %1076  ;;  %v830_v0 = vmul.f32 -1.442695, %v556_v55 }
 0x28b   :  { %v523_v35 = vpop.xlane.xlu0 %522  ;;  %1086 = vrcp.f32 %v608_v41  ;;  %v1079_v52 = vpop.eup %1078  ;;  %v610_v56 = vadd.f32 1.0, %v1077_v48  ;;  %v715_v48 = vsub.s32 %v712_v37, %v1421_v13 }
 0x28c   :  { %1088 = vpow2.f32 %v824_v44  ;;  %v555_v57 = vadd.f32 %v1424_v17, %v523_v35  ;;  %v1081_v61 = vpop.eup %1080  ;;  %v611_v62 = vadd.f32 1.0, %v1079_v52  ;;  %v719_v52 = vadd.s32 4294967240, %v1436_v50 }
 0x28d   :  { %1090 = vrcp.f32 %v609_v45  ;;  %v1083_v2 = vpop.eup %1082  ;;  %v612_v49 = vadd.f32 1.0, %v1081_v61 }
 0x28e   :  { %1092 = vpow2.f32 %v825_v47  ;;  %v829_v4 = vmul.f32 -1.442695, %v555_v57  ;;  %v613_v15 = vadd.f32 1.0, %v1083_v2 }
 0x28f   :  { %v529_v43 = vpop.xlane.xlu0 %528  ;;  %1094 = vpow2.f32 %v827_v53 }
 0x290   :  { %v557_v63 = vadd.f32 %v1424_v17, %v529_v43  ;;  %1096 = vrcp.f32 %v610_v56  ;;  %v726_v56 = vadd.s32 4294967232, %v1436_v50 }
 0x291   :  { %1098 = vpow2.f32 %v826_v60 }
 0x292   :  { %1100 = vrcp.f32 %v611_v62  ;;  %v831_v9 = vmul.f32 -1.442695, %v557_v63  ;;  %v722_v63 = vsub.s32 %v719_v52, %v1421_v13  ;;  %v729_v2 = vsub.s32 %v726_v56, %v1421_v13 }
 0x293   :  { %v532_v58 = vpop.xlane.xlu0 %531  ;;  %1102 = vpow2.f32 %v830_v0 }
 0x294   :  { %v558_v1 = vadd.f32 %v1424_v17, %v532_v58  ;;  %v1085_v5 = vpop.eup %1084  ;;  %1104 = vpow2.f32 %v829_v4 }
 0x295   :  { %v1087_v8 = vpop.eup %1086  ;;  %1106 = vrcp.f32 %v612_v49  ;;  %v676_v18 = vrot.slane %v1085_v5, %v675_v6  ;;  %v733_v5 = vadd.s32 4294967224, %v1436_v50 }
 0x296   :  { %v832_v10 = vmul.f32 -1.442695, %v558_v1  ;;  %v1089_v11 = vpop.eup %1088  ;;  %v681_v19 = vrot.slane %v1087_v8, %v680_v7  ;;  %1108 = vpow2.f32 %v831_v9  ;;  %v747_v7 = vadd.s32 4294967208, %v1436_v50 }
 0x297   :  { %v1091_v54 = vpop.eup %1090  ;;  %v614_v25 = vadd.f32 1.0, %v1089_v11  ;;  %v743_v9 = vsub.s32 %v740_v3, %v1421_v13 }
 0x298   :  { %v1093_v21 = vpop.eup %1092  ;;  %1110 = vpow2.f32 %v832_v10  ;;  %v688_v24 = vrot.slane %v1091_v54, %v687_v12  ;;  %v683_v27 = vsel %vm682_vm2, %v681_v19, %v676_v18  ;;  %v754_v10 = vadd.s32 4294967200, %v1436_v50 }
 0x299   :  { %1112 = vrcp.f32 %v613_v15  ;;  %v1095_v26 = vpop.eup %1094  ;;  %v615_v29 = vadd.f32 1.0, %v1093_v21  ;;  %v736_v12 = vsub.s32 %v733_v5, %v1421_v13  ;;  %v761_v15 = vadd.s32 4294967192, %v1436_v50 }
 0x29a   :  { %v1097_v30 = vpop.eup %1096  ;;  %v690_v33 = vsel %vm689_vm3, %v688_v24, %v683_v27  ;;  %v617_v38 = vadd.f32 1.0, %v1095_v26  ;;  %v768_v54 = vadd.s32 4294967184, %v1436_v50  ;;  %v750_v18 = vsub.s32 %v747_v7, %v1421_v13 }
 0x29b   :  { %v1099_v31 = vpop.eup %1098  ;;  %v695_v36 = vrot.slane %v1097_v30, %v694_v28  ;;  %v775_v19 = vadd.s32 4294967176, %v1436_v50  ;;  %v764_v26 = vsub.s32 %v761_v15, %v1421_v13 }
 0x29c   :  { %v1101_v32 = vpop.eup %1100  ;;  %v616_v40 = vadd.f32 1.0, %v1099_v31  ;;  %v771_v28 = vsub.s32 %v768_v54, %v1421_v13 }
 0x29d   :  { %v1103_v35 = vpop.eup %1102  ;;  %v697_v42 = vsel %vm696_vm4, %v695_v36, %v690_v33  ;;  %v702_v45 = vrot.slane %v1101_v32, %v701_v34 }
 0x29e   :  { %v1105_v39 = vpop.eup %1104  ;;  %v620_v46 = vadd.f32 1.0, %v1103_v35 }
 0x29f   :  { %v1107_v41 = vpop.eup %1106  ;;  %v619_v51 = vadd.f32 1.0, %v1105_v39  ;;  %v704_v55 = vsel %vm703_vm5, %v702_v45, %v697_v42 }
 0x2a0   :  { %v1109_v44 = vpop.eup %1108 }
 0x2a1   :  { %v621_v59 = vadd.f32 1.0, %v1109_v44 }
 0x2a2   :  { %v1111_v47 = vpop.eup %1110 }
 0x2a3   :  { %v1113_v53 = vpop.eup %1112  ;;  %v622_v60 = vadd.f32 1.0, %v1111_v47 }
 0x2a4   :  { %v716_v1 = vrot.slane %v1113_v53, %v715_v48 }
 0x2a7   :  { %v520_v16 = vpop.xlane.xlu1 %519 }
 0x2a8   :  { %v554_v20 = vadd.f32 %v1424_v17, %v520_v16  ;;  %v705_v17 = vadd.s32 4294967256, %v1436_v50  ;;  %v778_v50 = vsub.s32 %v775_v19, %v1421_v13 }
 0x2aa   :  { %v828_v23 = vmul.f32 -1.442695, %v554_v20  ;;  %v708_v43 = vsub.s32 %v705_v17, %v1421_v13 }
 0x2ac   :  { %1114 = vpow2.f32 %v828_v23  ;;  %v709_v58 = vrot.slane %v1107_v41, %v708_v43  ;;  %v757_v23 = vsub.s32 %v754_v10, %v1421_v13 }
 0x2ad   :  { %1116 = vrcp.f32 %v614_v25 }
 0x2ae   :  { %1118 = vrcp.f32 %v615_v29  ;;  %v711_v62 = vsel %vm710_vm6, %v709_v58, %v704_v55 }
 0x2af   :  { %1120 = vrcp.f32 %v617_v38  ;;  %v718_v49 = vsel %vm717_vm7, %v716_v1, %v711_v62 }
 0x2b0   :  { %1122 = vrcp.f32 %v616_v40 }
 0x2b1   :  { %1124 = vrcp.f32 %v620_v46 }
 0x2b2   :  { %1126 = vrcp.f32 %v619_v51 }
 0x2b6   :  { %v1115_v57 = vpop.eup %1114 }
 0x2b7   :  { %v618_v61 = vadd.f32 1.0, %v1115_v57  ;;  %v1117_v0 = vpop.eup %1116 }
 0x2b8   :  { %v1119_v4 = vpop.eup %1118  ;;  %v723_v6 = vrot.slane %v1117_v0, %v722_v63 }
 0x2b9   :  { %1128 = vrcp.f32 %v618_v61  ;;  %v730_v8 = vrot.slane %v1119_v4, %v729_v2  ;;  %v1121_v11 = vpop.eup %1120 }
 0x2ba   :  { %1130 = vrcp.f32 %v621_v59  ;;  %v725_v14 = vsel %vm724_vm8, %v723_v6, %v718_v49  ;;  %v1123_v16 = vpop.eup %1122  ;;  %v744_v21 = vrot.slane %v1121_v11, %v743_v9 }
 0x2bb   :  { %1132 = vrcp.f32 %v622_v60  ;;  %v1125_v20 = vpop.eup %1124  ;;  %v732_v22 = vsel %vm731_vm9, %v730_v8, %v725_v14  ;;  %v737_v25 = vrot.slane %v1123_v16, %v736_v12 }
 0x2bc   :  { %v1127_v24 = vpop.eup %1126  ;;  %v765_v35 = vrot.slane %v1125_v20, %v764_v26 }
 0x2bd   :  { %v739_v30 = vsel %vm738_vm10, %v737_v25, %v732_v22  ;;  %v758_v33 = vrot.slane %v1127_v24, %v757_v23 }
 0x2be   :  { %v746_v32 = vsel %vm745_vm11, %v744_v21, %v739_v30 }
 0x2c3   :  { %v1129_v27 = vpop.eup %1128 }
 0x2c4   :  { %v1131_v29 = vpop.eup %1130  ;;  %v751_v31 = vrot.slane %v1129_v27, %v750_v18 }
 0x2c5   :  { %v1133_v17 = vpop.eup %1132  ;;  %v772_v37 = vrot.slane %v1131_v29, %v771_v28 }
 0x2c6   :  { %v753_v34 = vsel %vm752_vm12, %v751_v31, %v746_v32  ;;  %v779_v39 = vrot.slane %v1133_v17, %v778_v50 }
 0x2c7   :  { %v760_v36 = vsel %vm759_vm13, %v758_v33, %v753_v34 }
 0x2c8   :  { %v767_v38 = vsel %vm766_vm14, %v765_v35, %v760_v36 }
 0x2c9   :  { %v774_v40 = vsel %vm773_vm15, %v772_v37, %v767_v38 }
 0x2ca   :  { %v781_v41 = vsel %vm780_vm0, %v779_v39, %v774_v40 }
 0x2cb   :  { %783 = vst [vmem:[#allocation3] sm:$0x1] %v781_v41 }
 0x2cc   :  { %1145 = shalt.err (!%p1142_p4)
}
 0x2cd   :  { %s1146_s29 = scalar_lea.hbm %s1495_s7, 16 }
 0x2ce   :  { %p1147_p5 = scmp.ne.s32.totalorder %s1495_s7, %s1146_s29  ;;  %p1150_p6 = scmp.lt.u32.totalorder %s1146_s29, %s1495_s7 }
 0x2d0   :  { %p1152_p7 = pnand %p1150_p6, %p1147_p5 }
 0x2d2   :  { %1155 = shalt.err (!%p1152_p7)
}
 0x2d3   :  { %793 = dma.vmem_to_hbm [thread:$0]  %s791_s5, 16, %s1495_s7, [#allocation4]  }
 0x2d4   :  { %1156 = dma.done.wait [#allocation4], 16  }
 0x2d5   :  { %1157 = vsyncadd [#allocation4], 4294967280 }
 0x2d6   :  { %797 = vsyncpa [#allocation4], 1 }

</bundles_post_ra>
